<compile_context>
chip_gen: v5e
topology: v5e:2x2
jax: 0.10.0
libtpu: 0.0.40
codegen_flags: <defaults>
</compile_context>

<pallas_src>
import functools

import jax
import jax.numpy as jnp
from jax.experimental import pallas as pl
from jax.experimental.pallas import tpu as pltpu


def _round_up(x, m):
    return (x + m - 1) // m * m


def _xcorr_kernel(x_ref, k_ref, o_ref, *, tap_offsets):
    """One batch per grid step.

    x_ref: (1, Cp, NFp)    compute-dtype padded input plane, spatially flattened (lane-dense)
    k_ref: (1, T, Op, Cp)  compute-dtype per-batch filters, one (Op, Cp) matrix per tap
    o_ref: (1, Op, NFp)    f32 full-plane correlation output, indexed by flat anchor position
    """
    x = x_ref[0]                     # (Cp, NFp); loaded once, shared by all tap matmuls
    nf = x.shape[-1]
    for t, d in enumerate(tap_offsets):
        # Per-tap contribution at every anchor position: Y[o, m] = sum_c k[o,c,tap] * x[c, m]
        y = jnp.dot(k_ref[0, t], x, preferred_element_type=jnp.float32)   # (Op, NFp)
        if t == 0:
            # tap (0,0) has offset 0 and covers the full plane: initializes the output block
            o_ref[0] = y
        elif d == 0:
            o_ref[0] += y
        else:
            # out[m] += Y[m + d]: statically shifted add; the tail anchors this skips are
            # invalid (right/bottom halo) and get discarded by the wrapper.
            o_ref[0, :, : nf - d] += y[:, d:]


def correlation(x, kernel, stride=1, padding=0, *, compute_dtype=jnp.bfloat16):
    """Pallas equivalent of Correlation.forward (slow/fast training path == eval, groups=1).

    Note: compute_dtype=bfloat16 (default) changes numerics vs PyTorch's f32 conv2d; pass
    compute_dtype=jnp.float32 for full-precision parity (accumulation is always f32).
    """
    B, C, H, W = x.shape
    Bk, KC, kH, kW = kernel.shape
    assert Bk == B and KC % C == 0
    O = KC // C

    Hp, Wp = H + 2 * padding, W + 2 * padding
    assert Hp >= kH and Wp >= kW
    oH = (Hp - kH) // stride + 1
    oW = (Wp - kW) // stride + 1
    T = kH * kW
    NF = Hp * Wp

    c_itemsize = jnp.dtype(compute_dtype).itemsize
    sub = 16 if c_itemsize == 2 else 8          # bf16 packs 2 rows per sublane
    Cp = _round_up(C, sub)
    Op = _round_up(O, sub)
    NFp = _round_up(NF, 128)                    # lane-dense spatial slab

    # ---- wrapper glue: all 1x-traffic layout ops, cast to compute dtype BEFORE padding ----
    xc = x.astype(compute_dtype)
    xp = jnp.pad(xc, ((0, 0), (0, 0), (padding, padding), (padding, padding)))
    xf = xp.reshape(B, C, NF)
    xf = jnp.pad(xf, ((0, 0), (0, Cp - C), (0, NFp - NF)))            # (B, Cp, NFp)

    kr = kernel.reshape(B, O, C, kH, kW).astype(compute_dtype)
    kr = jnp.transpose(kr, (0, 3, 4, 1, 2)).reshape(B, T, O, C)       # tap-major, (O, C) per tap
    kr = jnp.pad(kr, ((0, 0), (0, 0), (0, Op - O), (0, Cp - C)))      # (B, T, Op, Cp)

    # Flat-index shift of each tap (p, q) in the padded plane; tap 0 is (0, 0).
    tap_offsets = tuple(p * Wp + q for p in range(kH) for q in range(kW))
    assert tap_offsets[0] == 0

    # ---- scheduling hints -------------------------------------------------------------------
    cost = pl.CostEstimate(
        flops=2 * B * T * Op * Cp * NFp,
        transcendentals=0,
        bytes_accessed=int(xf.size * c_itemsize + kr.size * c_itemsize + B * Op * NFp * 4),
    )
    block_bytes = (Cp * NFp + T * Op * Cp) * c_itemsize + Op * NFp * 4
    # double-buffered blocks + headroom; cap at 48 MiB (safe on v7x's 64 MiB, fine on v5e/v6e)
    vmem_bytes = int(min(max(2 * block_bytes + (4 << 20), 8 << 20), 48 << 20))

    out_full = pl.pallas_call(
        functools.partial(_xcorr_kernel, tap_offsets=tap_offsets),
        out_shape=jax.ShapeDtypeStruct((B, Op, NFp), jnp.float32),
        grid=(B,),
        in_specs=[
            pl.BlockSpec((1, Cp, NFp), lambda b: (b, 0, 0)),          # input plane
            pl.BlockSpec((1, T, Op, Cp), lambda b: (b, 0, 0, 0)),     # per-batch filters
        ],
        out_specs=pl.BlockSpec((1, Op, NFp), lambda b: (b, 0, 0)),
        compiler_params=pltpu.CompilerParams(
            dimension_semantics=("parallel",),
            vmem_limit_bytes=vmem_bytes,
        ),
        cost_estimate=cost,
    )(xf, kr)

    # Full-plane anchor output -> select valid, stride-subsampled anchors.
    full = out_full[:, :O, :NF].reshape(B, O, Hp, Wp)
    out = full[:, :, ::stride, ::stride][:, :, :oH, :oW]
    return out.astype(x.dtype)


def _reference(x, kernel, stride, padding):
    """Pure-JAX reference matching PyTorch F.conv2d (cross-correlation) per batch."""
    B, C, H, W = x.shape
    O = kernel.shape[1] // C
    kH, kW = kernel.shape[2], kernel.shape[3]
    outs = []
    for b in range(B):
        kb = kernel[b].reshape(O, C, kH, kW)
        ob = jax.lax.conv_general_dilated(
            x[b:b + 1],
            kb,
            window_strides=(stride, stride),
            padding=[(padding, padding), (padding, padding)],
            dimension_numbers=("NCHW", "OIHW", "NCHW"),
            precision=jax.lax.Precision.HIGHEST,
        )
        outs.append(ob)
    return jnp.concatenate(outs, axis=0)


def _check(B, C, H, W, O, kH, kW, stride, padding, seed):
    key = jax.random.PRNGKey(seed)
    kx, kk = jax.random.split(key)
    x = jax.random.normal(kx, (B, C, H, W), dtype=jnp.float32)
    kernel = jax.random.normal(kk, (B, O * C, kH, kW), dtype=jnp.float32)
    # Quantize inputs to the bf16 grid so the bf16-MXU kernel and the f32 reference
    # compute on identical values (remaining differences are only summation order).
    xq = x.astype(jnp.bfloat16).astype(jnp.float32)
    kq = kernel.astype(jnp.bfloat16).astype(jnp.float32)

    out = correlation(xq, kq, stride=stride, padding=padding)
    out = jax.block_until_ready(out)

    ref = _reference(xq, kq, stride, padding)
    assert out.shape == ref.shape, (out.shape, ref.shape)
    err = float(jnp.max(jnp.abs(out - ref)))
    assert jnp.allclose(out, ref, atol=1e-2, rtol=1e-2), err
    return err


if __name__ == "__main__":
    # Small, deterministic configs consistent with the module's expected use.
    _check(B=2, C=4, H=16, W=16, O=2, kH=3, kW=3, stride=1, padding=1, seed=0)
    _check(B=2, C=4, H=16, W=16, O=3, kH=3, kW=3, stride=2, padding=0, seed=1)
    _check(B=1, C=8, H=12, W=12, O=4, kH=5, kW=5, stride=1, padding=2, seed=2)
    print("KERNEL_OK")
</pallas_src>

<mosaic_0001>
module attributes {stable_mosaic.version = 11 : i64} {
  func.func @_xcorr_kernel(%arg0: i32, %arg1: memref<1x16x384xbf16, #tpu.memory_space<vmem>>, %arg2: memref<1x9x16x16xbf16, #tpu.memory_space<vmem>>, %arg3: memref<1x16x384xf32, #tpu.memory_space<vmem>>) attributes {dimension_semantics = [#tpu.dimension_semantics<parallel>], iteration_bounds = array<i64: 2>, scalar_prefetch = 0 : i64, scratch_operands = 0 : i64, tpu.core_type = #tpu.core_type<tc>, window_params = [{transform_indices = @transform_0, window_bounds = array<i64: 1, 16, 384>}, {transform_indices = @transform_1, window_bounds = array<i64: 1, 9, 16, 16>}, {transform_indices = @transform_2, window_bounds = array<i64: 1, 16, 384>}]} {
    %c0 = arith.constant 0 : index
    %c0_0 = arith.constant 0 : index
    %c0_1 = arith.constant 0 : index
    %0 = vector.load %arg1[%c0, %c0_0, %c0_1] : memref<1x16x384xbf16, #tpu.memory_space<vmem>>, vector<1x16x384xbf16>
    %1 = vector.shape_cast %0 : vector<1x16x384xbf16> to vector<16x384xbf16>
    %c0_2 = arith.constant 0 : index
    %c0_3 = arith.constant 0 : index
    %c0_4 = arith.constant 0 : index
    %c0_5 = arith.constant 0 : index
    %2 = vector.load %arg2[%c0_2, %c0_3, %c0_4, %c0_5] : memref<1x9x16x16xbf16, #tpu.memory_space<vmem>>, vector<1x1x16x16xbf16>
    %3 = vector.shape_cast %2 : vector<1x1x16x16xbf16> to vector<16x16xbf16>
    %cst = arith.constant dense<0.000000e+00> : vector<16x384xf32>
    %4 = tpu.matmul %3, %1, %cst {dimension_numbers = #tpu.dot_dimension_numbers<[1], [0], [0], [1], [0, 0, 1, 1], [], []>} : vector<16x16xbf16>, vector<16x384xbf16>, vector<16x384xf32> -> vector<16x384xf32>
    %c0_6 = arith.constant 0 : index
    %c0_7 = arith.constant 0 : index
    %c0_8 = arith.constant 0 : index
    %5 = vector.load %arg3[%c0_6, %c0_7, %c0_8] : memref<1x16x384xf32, #tpu.memory_space<vmem>>, vector<1x16x384xf32>
    %6 = vector.shape_cast %5 : vector<1x16x384xf32> to vector<16x384xf32>
    %7 = vector.shape_cast %4 : vector<16x384xf32> to vector<1x16x384xf32>
    tpu.vector_store %arg3[%c0_6, %c0_7, %c0_8], %7 {strides = array<i32>} : memref<1x16x384xf32, #tpu.memory_space<vmem>>, vector<1x16x384xf32>,
    %c0_9 = arith.constant 0 : index
    %c1 = arith.constant 1 : index
    %c0_10 = arith.constant 0 : index
    %c0_11 = arith.constant 0 : index
    %8 = vector.load %arg2[%c0_9, %c1, %c0_10, %c0_11] : memref<1x9x16x16xbf16, #tpu.memory_space<vmem>>, vector<1x1x16x16xbf16>
    %9 = vector.shape_cast %8 : vector<1x1x16x16xbf16> to vector<16x16xbf16>
    %cst_12 = arith.constant dense<0.000000e+00> : vector<16x384xf32>
    %10 = tpu.matmul %9, %1, %cst_12 {dimension_numbers = #tpu.dot_dimension_numbers<[1], [0], [0], [1], [0, 0, 1, 1], [], []>} : vector<16x16xbf16>, vector<16x384xbf16>, vector<16x384xf32> -> vector<16x384xf32>
    %c0_13 = arith.constant 0 : index
    %c0_14 = arith.constant 0 : index
    %c0_15 = arith.constant 0 : index
    %11 = vector.load %arg3[%c0_13, %c0_14, %c0_15] : memref<1x16x384xf32, #tpu.memory_space<vmem>>, vector<1x16x383xf32>
    %12 = vector.shape_cast %11 : vector<1x16x383xf32> to vector<16x383xf32>
    %13 = vector.extract_strided_slice %10 {offsets = [0, 1], sizes = [16, 383], strides = [1, 1]} : vector<16x384xf32> to vector<16x383xf32>
    %14 = arith.addf %12, %13 : vector<16x383xf32>
    %c0_16 = arith.constant 0 : index
    %c0_17 = arith.constant 0 : index
    %c0_18 = arith.constant 0 : index
    %15 = vector.load %arg3[%c0_16, %c0_17, %c0_18] : memref<1x16x384xf32, #tpu.memory_space<vmem>>, vector<1x16x383xf32>
    %16 = vector.shape_cast %15 : vector<1x16x383xf32> to vector<16x383xf32>
    %17 = vector.shape_cast %14 : vector<16x383xf32> to vector<1x16x383xf32>
    tpu.vector_store %arg3[%c0_16, %c0_17, %c0_18], %17 {strides = array<i32>} : memref<1x16x384xf32, #tpu.memory_space<vmem>>, vector<1x16x383xf32>,
    %c0_19 = arith.constant 0 : index
    %c2 = arith.constant 2 : index
    %c0_20 = arith.constant 0 : index
    %c0_21 = arith.constant 0 : index
    %18 = vector.load %arg2[%c0_19, %c2, %c0_20, %c0_21] : memref<1x9x16x16xbf16, #tpu.memory_space<vmem>>, vector<1x1x16x16xbf16>
    %19 = vector.shape_cast %18 : vector<1x1x16x16xbf16> to vector<16x16xbf16>
    %cst_22 = arith.constant dense<0.000000e+00> : vector<16x384xf32>
    %20 = tpu.matmul %19, %1, %cst_22 {dimension_numbers = #tpu.dot_dimension_numbers<[1], [0], [0], [1], [0, 0, 1, 1], [], []>} : vector<16x16xbf16>, vector<16x384xbf16>, vector<16x384xf32> -> vector<16x384xf32>
    %c0_23 = arith.constant 0 : index
    %c0_24 = arith.constant 0 : index
    %c0_25 = arith.constant 0 : index
    %21 = vector.load %arg3[%c0_23, %c0_24, %c0_25] : memref<1x16x384xf32, #tpu.memory_space<vmem>>, vector<1x16x382xf32>
    %22 = vector.shape_cast %21 : vector<1x16x382xf32> to vector<16x382xf32>
    %23 = vector.extract_strided_slice %20 {offsets = [0, 2], sizes = [16, 382], strides = [1, 1]} : vector<16x384xf32> to vector<16x382xf32>
    %24 = arith.addf %22, %23 : vector<16x382xf32>
    %c0_26 = arith.constant 0 : index
    %c0_27 = arith.constant 0 : index
    %c0_28 = arith.constant 0 : index
    %25 = vector.load %arg3[%c0_26, %c0_27, %c0_28] : memref<1x16x384xf32, #tpu.memory_space<vmem>>, vector<1x16x382xf32>
    %26 = vector.shape_cast %25 : vector<1x16x382xf32> to vector<16x382xf32>
    %27 = vector.shape_cast %24 : vector<16x382xf32> to vector<1x16x382xf32>
    tpu.vector_store %arg3[%c0_26, %c0_27, %c0_28], %27 {strides = array<i32>} : memref<1x16x384xf32, #tpu.memory_space<vmem>>, vector<1x16x382xf32>,
    %c0_29 = arith.constant 0 : index
    %c3 = arith.constant 3 : index
    %c0_30 = arith.constant 0 : index
    %c0_31 = arith.constant 0 : index
    %28 = vector.load %arg2[%c0_29, %c3, %c0_30, %c0_31] : memref<1x9x16x16xbf16, #tpu.memory_space<vmem>>, vector<1x1x16x16xbf16>
    %29 = vector.shape_cast %28 : vector<1x1x16x16xbf16> to vector<16x16xbf16>
    %cst_32 = arith.constant dense<0.000000e+00> : vector<16x384xf32>
    %30 = tpu.matmul %29, %1, %cst_32 {dimension_numbers = #tpu.dot_dimension_numbers<[1], [0], [0], [1], [0, 0, 1, 1], [], []>} : vector<16x16xbf16>, vector<16x384xbf16>, vector<16x384xf32> -> vector<16x384xf32>
    %c0_33 = arith.constant 0 : index
    %c0_34 = arith.constant 0 : index
    %c0_35 = arith.constant 0 : index
    %31 = vector.load %arg3[%c0_33, %c0_34, %c0_35] : memref<1x16x384xf32, #tpu.memory_space<vmem>>, vector<1x16x366xf32>
    %32 = vector.shape_cast %31 : vector<1x16x366xf32> to vector<16x366xf32>
    %33 = vector.extract_strided_slice %30 {offsets = [0, 18], sizes = [16, 366], strides = [1, 1]} : vector<16x384xf32> to vector<16x366xf32>
    %34 = arith.addf %32, %33 : vector<16x366xf32>
    %c0_36 = arith.constant 0 : index
    %c0_37 = arith.constant 0 : index
    %c0_38 = arith.constant 0 : index
    %35 = vector.load %arg3[%c0_36, %c0_37, %c0_38] : memref<1x16x384xf32, #tpu.memory_space<vmem>>, vector<1x16x366xf32>
    %36 = vector.shape_cast %35 : vector<1x16x366xf32> to vector<16x366xf32>
    %37 = vector.shape_cast %34 : vector<16x366xf32> to vector<1x16x366xf32>
    tpu.vector_store %arg3[%c0_36, %c0_37, %c0_38], %37 {strides = array<i32>} : memref<1x16x384xf32, #tpu.memory_space<vmem>>, vector<1x16x366xf32>,
    %c0_39 = arith.constant 0 : index
    %c4 = arith.constant 4 : index
    %c0_40 = arith.constant 0 : index
    %c0_41 = arith.constant 0 : index
    %38 = vector.load %arg2[%c0_39, %c4, %c0_40, %c0_41] : memref<1x9x16x16xbf16, #tpu.memory_space<vmem>>, vector<1x1x16x16xbf16>
    %39 = vector.shape_cast %38 : vector<1x1x16x16xbf16> to vector<16x16xbf16>
    %cst_42 = arith.constant dense<0.000000e+00> : vector<16x384xf32>
    %40 = tpu.matmul %39, %1, %cst_42 {dimension_numbers = #tpu.dot_dimension_numbers<[1], [0], [0], [1], [0, 0, 1, 1], [], []>} : vector<16x16xbf16>, vector<16x384xbf16>, vector<16x384xf32> -> vector<16x384xf32>
    %c0_43 = arith.constant 0 : index
    %c0_44 = arith.constant 0 : index
    %c0_45 = arith.constant 0 : index
    %41 = vector.load %arg3[%c0_43, %c0_44, %c0_45] : memref<1x16x384xf32, #tpu.memory_space<vmem>>, vector<1x16x365xf32>
    %42 = vector.shape_cast %41 : vector<1x16x365xf32> to vector<16x365xf32>
    %43 = vector.extract_strided_slice %40 {offsets = [0, 19], sizes = [16, 365], strides = [1, 1]} : vector<16x384xf32> to vector<16x365xf32>
    %44 = arith.addf %42, %43 : vector<16x365xf32>
    %c0_46 = arith.constant 0 : index
    %c0_47 = arith.constant 0 : index
    %c0_48 = arith.constant 0 : index
    %45 = vector.load %arg3[%c0_46, %c0_47, %c0_48] : memref<1x16x384xf32, #tpu.memory_space<vmem>>, vector<1x16x365xf32>
    %46 = vector.shape_cast %45 : vector<1x16x365xf32> to vector<16x365xf32>
    %47 = vector.shape_cast %44 : vector<16x365xf32> to vector<1x16x365xf32>
    tpu.vector_store %arg3[%c0_46, %c0_47, %c0_48], %47 {strides = array<i32>} : memref<1x16x384xf32, #tpu.memory_space<vmem>>, vector<1x16x365xf32>,
    %c0_49 = arith.constant 0 : index
    %c5 = arith.constant 5 : index
    %c0_50 = arith.constant 0 : index
    %c0_51 = arith.constant 0 : index
    %48 = vector.load %arg2[%c0_49, %c5, %c0_50, %c0_51] : memref<1x9x16x16xbf16, #tpu.memory_space<vmem>>, vector<1x1x16x16xbf16>
    %49 = vector.shape_cast %48 : vector<1x1x16x16xbf16> to vector<16x16xbf16>
    %cst_52 = arith.constant dense<0.000000e+00> : vector<16x384xf32>
    %50 = tpu.matmul %49, %1, %cst_52 {dimension_numbers = #tpu.dot_dimension_numbers<[1], [0], [0], [1], [0, 0, 1, 1], [], []>} : vector<16x16xbf16>, vector<16x384xbf16>, vector<16x384xf32> -> vector<16x384xf32>
    %c0_53 = arith.constant 0 : index
    %c0_54 = arith.constant 0 : index
    %c0_55 = arith.constant 0 : index
    %51 = vector.load %arg3[%c0_53, %c0_54, %c0_55] : memref<1x16x384xf32, #tpu.memory_space<vmem>>, vector<1x16x364xf32>
    %52 = vector.shape_cast %51 : vector<1x16x364xf32> to vector<16x364xf32>
    %53 = vector.extract_strided_slice %50 {offsets = [0, 20], sizes = [16, 364], strides = [1, 1]} : vector<16x384xf32> to vector<16x364xf32>
    %54 = arith.addf %52, %53 : vector<16x364xf32>
    %c0_56 = arith.constant 0 : index
    %c0_57 = arith.constant 0 : index
    %c0_58 = arith.constant 0 : index
    %55 = vector.load %arg3[%c0_56, %c0_57, %c0_58] : memref<1x16x384xf32, #tpu.memory_space<vmem>>, vector<1x16x364xf32>
    %56 = vector.shape_cast %55 : vector<1x16x364xf32> to vector<16x364xf32>
    %57 = vector.shape_cast %54 : vector<16x364xf32> to vector<1x16x364xf32>
    tpu.vector_store %arg3[%c0_56, %c0_57, %c0_58], %57 {strides = array<i32>} : memref<1x16x384xf32, #tpu.memory_space<vmem>>, vector<1x16x364xf32>,
    %c0_59 = arith.constant 0 : index
    %c6 = arith.constant 6 : index
    %c0_60 = arith.constant 0 : index
    %c0_61 = arith.constant 0 : index
    %58 = vector.load %arg2[%c0_59, %c6, %c0_60, %c0_61] : memref<1x9x16x16xbf16, #tpu.memory_space<vmem>>, vector<1x1x16x16xbf16>
    %59 = vector.shape_cast %58 : vector<1x1x16x16xbf16> to vector<16x16xbf16>
    %cst_62 = arith.constant dense<0.000000e+00> : vector<16x384xf32>
    %60 = tpu.matmul %59, %1, %cst_62 {dimension_numbers = #tpu.dot_dimension_numbers<[1], [0], [0], [1], [0, 0, 1, 1], [], []>} : vector<16x16xbf16>, vector<16x384xbf16>, vector<16x384xf32> -> vector<16x384xf32>
    %c0_63 = arith.constant 0 : index
    %c0_64 = arith.constant 0 : index
    %c0_65 = arith.constant 0 : index
    %61 = vector.load %arg3[%c0_63, %c0_64, %c0_65] : memref<1x16x384xf32, #tpu.memory_space<vmem>>, vector<1x16x348xf32>
    %62 = vector.shape_cast %61 : vector<1x16x348xf32> to vector<16x348xf32>
    %63 = vector.extract_strided_slice %60 {offsets = [0, 36], sizes = [16, 348], strides = [1, 1]} : vector<16x384xf32> to vector<16x348xf32>
    %64 = arith.addf %62, %63 : vector<16x348xf32>
    %c0_66 = arith.constant 0 : index
    %c0_67 = arith.constant 0 : index
    %c0_68 = arith.constant 0 : index
    %65 = vector.load %arg3[%c0_66, %c0_67, %c0_68] : memref<1x16x384xf32, #tpu.memory_space<vmem>>, vector<1x16x348xf32>
    %66 = vector.shape_cast %65 : vector<1x16x348xf32> to vector<16x348xf32>
    %67 = vector.shape_cast %64 : vector<16x348xf32> to vector<1x16x348xf32>
    tpu.vector_store %arg3[%c0_66, %c0_67, %c0_68], %67 {strides = array<i32>} : memref<1x16x384xf32, #tpu.memory_space<vmem>>, vector<1x16x348xf32>,
    %c0_69 = arith.constant 0 : index
    %c7 = arith.constant 7 : index
    %c0_70 = arith.constant 0 : index
    %c0_71 = arith.constant 0 : index
    %68 = vector.load %arg2[%c0_69, %c7, %c0_70, %c0_71] : memref<1x9x16x16xbf16, #tpu.memory_space<vmem>>, vector<1x1x16x16xbf16>
    %69 = vector.shape_cast %68 : vector<1x1x16x16xbf16> to vector<16x16xbf16>
    %cst_72 = arith.constant dense<0.000000e+00> : vector<16x384xf32>
    %70 = tpu.matmul %69, %1, %cst_72 {dimension_numbers = #tpu.dot_dimension_numbers<[1], [0], [0], [1], [0, 0, 1, 1], [], []>} : vector<16x16xbf16>, vector<16x384xbf16>, vector<16x384xf32> -> vector<16x384xf32>
    %c0_73 = arith.constant 0 : index
    %c0_74 = arith.constant 0 : index
    %c0_75 = arith.constant 0 : index
    %71 = vector.load %arg3[%c0_73, %c0_74, %c0_75] : memref<1x16x384xf32, #tpu.memory_space<vmem>>, vector<1x16x347xf32>
    %72 = vector.shape_cast %71 : vector<1x16x347xf32> to vector<16x347xf32>
    %73 = vector.extract_strided_slice %70 {offsets = [0, 37], sizes = [16, 347], strides = [1, 1]} : vector<16x384xf32> to vector<16x347xf32>
    %74 = arith.addf %72, %73 : vector<16x347xf32>
    %c0_76 = arith.constant 0 : index
    %c0_77 = arith.constant 0 : index
    %c0_78 = arith.constant 0 : index
    %75 = vector.load %arg3[%c0_76, %c0_77, %c0_78] : memref<1x16x384xf32, #tpu.memory_space<vmem>>, vector<1x16x347xf32>
    %76 = vector.shape_cast %75 : vector<1x16x347xf32> to vector<16x347xf32>
    %77 = vector.shape_cast %74 : vector<16x347xf32> to vector<1x16x347xf32>
    tpu.vector_store %arg3[%c0_76, %c0_77, %c0_78], %77 {strides = array<i32>} : memref<1x16x384xf32, #tpu.memory_space<vmem>>, vector<1x16x347xf32>,
    %c0_79 = arith.constant 0 : index
    %c8 = arith.constant 8 : index
    %c0_80 = arith.constant 0 : index
    %c0_81 = arith.constant 0 : index
    %78 = vector.load %arg2[%c0_79, %c8, %c0_80, %c0_81] : memref<1x9x16x16xbf16, #tpu.memory_space<vmem>>, vector<1x1x16x16xbf16>
    %79 = vector.shape_cast %78 : vector<1x1x16x16xbf16> to vector<16x16xbf16>
    %cst_82 = arith.constant dense<0.000000e+00> : vector<16x384xf32>
    %80 = tpu.matmul %79, %1, %cst_82 {dimension_numbers = #tpu.dot_dimension_numbers<[1], [0], [0], [1], [0, 0, 1, 1], [], []>} : vector<16x16xbf16>, vector<16x384xbf16>, vector<16x384xf32> -> vector<16x384xf32>
    %c0_83 = arith.constant 0 : index
    %c0_84 = arith.constant 0 : index
    %c0_85 = arith.constant 0 : index
    %81 = vector.load %arg3[%c0_83, %c0_84, %c0_85] : memref<1x16x384xf32, #tpu.memory_space<vmem>>, vector<1x16x346xf32>
    %82 = vector.shape_cast %81 : vector<1x16x346xf32> to vector<16x346xf32>
    %83 = vector.extract_strided_slice %80 {offsets = [0, 38], sizes = [16, 346], strides = [1, 1]} : vector<16x384xf32> to vector<16x346xf32>
    %84 = arith.addf %82, %83 : vector<16x346xf32>
    %c0_86 = arith.constant 0 : index
    %c0_87 = arith.constant 0 : index
    %c0_88 = arith.constant 0 : index
    %85 = vector.load %arg3[%c0_86, %c0_87, %c0_88] : memref<1x16x384xf32, #tpu.memory_space<vmem>>, vector<1x16x346xf32>
    %86 = vector.shape_cast %85 : vector<1x16x346xf32> to vector<16x346xf32>
    %87 = vector.shape_cast %84 : vector<16x346xf32> to vector<1x16x346xf32>
    tpu.vector_store %arg3[%c0_86, %c0_87, %c0_88], %87 {strides = array<i32>} : memref<1x16x384xf32, #tpu.memory_space<vmem>>, vector<1x16x346xf32>,
    return
  }
  func.func @transform_0(%arg0: i32) -> (i32, i32, i32) {
    %c0_i32 = arith.constant 0 : i32
    %c0_i32_0 = arith.constant 0 : i32
    %c0_i32_1 = arith.constant 0 : i32
    return %arg0, %c0_i32, %c0_i32_0 : i32, i32, i32
  }
  func.func @transform_1(%arg0: i32) -> (i32, i32, i32, i32) {
    %c0_i32 = arith.constant 0 : i32
    %c0_i32_0 = arith.constant 0 : i32
    %c0_i32_1 = arith.constant 0 : i32
    %c0_i32_2 = arith.constant 0 : i32
    return %arg0, %c0_i32, %c0_i32_0, %c0_i32_1 : i32, i32, i32, i32
  }
  func.func @transform_2(%arg0: i32) -> (i32, i32, i32) {
    %c0_i32 = arith.constant 0 : i32
    %c0_i32_0 = arith.constant 0 : i32
    %c0_i32_1 = arith.constant 0 : i32
    return %arg0, %c0_i32, %c0_i32_0 : i32, i32, i32
  }
}

</mosaic_0001>

<bundles_post_ra>
// kernel: tpu_custom_call.1
= control target key start
LH: loop header
LB: loop body
LE: loop exit
PB: predicated region body
PF: predicated region fallthrough
CT: control target
= control target key end

     0   :  { %7 = vsyncpa [#allocation3], 0  ;;  %s1855_s0 = inlined_call_operand.hbm [shape: bf16[2,16,384], index: 0, kind: input, shape index: {}]   ;;  %s1856_s1 = inlined_call_operand.hbm [shape: bf16[2,9,16,16], index: 1, kind: input, shape index: {}]   ;;  %s1857_s2 = inlined_call_operand.hbm [shape: f32[2,16,384], index: 2, kind: output, shape index: {}]  }
   0x1   :  { %9 = vsyncpa [#allocation3 + $0x1], 0 }
   0x2   :  { %10 = vsyncpa [#allocation6], 0 }
   0x3   :  { %12 = vsyncpa [#allocation6 + $0x1], 0 }
   0x4   :  { %13 = vsyncpa [#allocation4], 0 }
   0x5   :  { %15 = vsyncpa [#allocation4 + $0x1], 0  ;;  %s1544_s9 = smov 0   ;;  %s1546_s10 = smov 0  }
   0x6   :  { %s1548_s11 = smov 0   ;;  %s1550_s12 = smov 0  }
   0x7 LB: > { %s1565_s13 = sadd.s32 4294967295, %s1513_s12   ;;  %s1198_s14 = sadd.s32 4294967294, %s1513_s12   ;;  %s1513_s12 = sphi %s1550_s12, %s1866_s12   ;;  %s1509_s11 = sphi %s1548_s11, %s1865_s11   ;;  %s1505_s10 = sphi %s1546_s10, %s1864_s10   ;;  %s1501_s9 = sphi %s1544_s9, %s1863_s9  }
   0x8   : > { %s1569_s15 = sadd.s32 1, %s1513_s12   ;;  %s28_s16 = sadd.s32 1, %s1509_s11 }
   0x9   : > { %s25_s17 = ssub.s32 %s1513_s12, %s1569_s15  ;;  %p35_p0 = scmp.ne.s32.totalorder %s1509_s11, %s1505_s10 }
   0xa   : > { %p26_p1 = scmp.eq.s32.totalorder %s25_s17, 0  ;;  %p36_p2 = scmp.eq.s32.totalorder %s1513_s12, 0 }
   0xb   : > { %p41_p3 = scmp.ne.s32.totalorder %s1505_s10, %s1501_s9  ;;  %p42_p4 = scmp.eq.s32.totalorder %s1565_s13, 0 }
   0xc   : > { %s1581_s18 = scalar_select %p26_p1, %s1509_s11, %s28_s16  }
   0xd   : > { %p37_p5 = por %p36_p2, %p35_p0  ;;  %p1583_p6 = por %p42_p4, %p41_p3 }
   0xe   : > { %p91_p7 = scmp.eq.s32.totalorder %s1565_s13, 1  ;;  %p97_p8 = scmp.eq.s32.totalorder %s1198_s14, 1 }
   0xf   : > { %p1200_p9 = scmp.ge.s32.totalorder %s1513_s12, 2  ;;  %p1335_p10 = scmp.lt.s32.totalorder %s1513_s12, 2 }
  0x10   : > { %p1590_p11 = por %p91_p7, %p35_p0  ;;  %p1594_p12 = por %p97_p8, %p41_p3 }
  0x11   : > { %s1599_s22 = sand.u32 1, %s1509_s11   ;;  %s1311_s23 = smul.u32 24, %s1513_s12 }
  0x12   : > { %s1310_s24 = smul.u32 24, %s1599_s22  ;;  %p1606_p13 = pnand %p1335_p10, %p37_p5 }
  0x13   : > { %s126_s27 = scalar_lea.hbm %s1855_s0, %s1311_s23  ;;  %s118_s4 = scalar_lea.sflag [#allocation3], %s1599_s22 }
  0x14   : > { %s127_s29 = sshll.u32 %s126_s27, 4  ;;  %s121_s30 = scalar_lea.vmem [#allocation2], %s1310_s24  ;;  %s128_s29 = int_to_ptr.hbm [resolvable:$true] %s127_s29 }
  0x15   : > { %s129_s3 = sshll.u32 %s121_s30, 4  ;;  %s1383_s5 = sshra.s32 %s128_s29, 4  ;;  %s130_s3 = int_to_ptr.vmem [resolvable:$true] %s129_s3  ;;  %s1384_s5 = int_to_ptr.hbm [resolvable:$true] %s1383_s5 }
  0x16   : > { %s1385_s6 = scalar_lea.hbm %s1384_s5, 24  ;;  %p1387_p1 = pneg %p1606_p13 }
  0x17   : > { %p1386_p0 = scmp.ne.s32.totalorder %s1384_s5, %s1385_s6  ;;  %s1390_s14 = scalar_lea.hbm %s1855_s0, 48 }
  0x18   : > { %p1391_p4 = scmp.lt.s32.totalorder %s1384_s5, %s1855_s0  ;;  %p1392_p5 = scmp.lt.s32.totalorder %s1390_s14, %s1385_s6 }
  0x19   : > { %p1388_p2 = pnand %p1387_p1, %p1386_p0 }
  0x1a   : > { %p1393_p7 = por %p1392_p5, %p1391_p4 }
  0x1b   : > { %p1389_p3 = pneg %p1388_p2 }
  0x1d   : > { %p1394_p8 = pnand %p1393_p7, %p1389_p3 }
  0x1f   : > { %1397 = shalt.err (!%p1394_p8)
}
  0x20   : > { %s1515_s23 = smov 192   ;;  %s1516_s24 = smov 12  }
  0x21   : > { %1327 = dma.hbm_to_vmem [thread:$0]  (!%p1606_p13), %s128_s29, 384, %s130_s3, %s118_s4, %s1515_s23, %s1515_s23, %s1516_s24  }
  0x22   : > { %p1203_p10 = scmp.ge.s32.totalorder %s1513_s12, 1  ;;  %p159_p0 = scmp.lt.s32.totalorder %s1513_s12, 3 }
  0x23   : > { %s1312_s25 = smul.u32 72, %s1599_s22  ;;  %s140_s16 = scalar_lea.sflag [#allocation6], %s1599_s22 }
  0x24   : > { %p1627_p2 = pnand %p1203_p10, %p159_p0  ;;  %s1313_s27 = smul.u32 72, %s1513_s12 }
  0x25   : > { %s143_s7 = scalar_lea.vmem [#allocation5], %s1312_s25  ;;  %s1420_s23 = scalar_lea.hbm %s1856_s1, 144 }
  0x26   : > { %s148_s6 = scalar_lea.hbm %s1856_s1, %s1313_s27  ;;  %s151_s8 = sshll.u32 %s143_s7, 4  ;;  %s152_s8 = int_to_ptr.vmem [resolvable:$true] %s151_s8 }
  0x27   : > { %s149_s14 = sshll.u32 %s148_s6, 4  ;;  %s150_s14 = int_to_ptr.hbm [resolvable:$true] %s149_s14 }
  0x28   : > { %s1413_s29 = sshra.s32 %s150_s14, 4  ;;  %s1414_s29 = int_to_ptr.hbm [resolvable:$true] %s1413_s29 }
  0x29   : > { %s1415_s3 = scalar_lea.hbm %s1414_s29, 72  ;;  %p1421_p7 = scmp.lt.s32.totalorder %s1414_s29, %s1856_s1 }
  0x2a   : > { %p1416_p3 = scmp.ne.s32.totalorder %s1414_s29, %s1415_s3  ;;  %p1422_p8 = scmp.lt.s32.totalorder %s1420_s23, %s1415_s3 }
  0x2c   : > { %p1418_p4 = pnand %p1416_p3, %p1387_p1  ;;  %p1423_p10 = por %p1422_p8, %p1421_p7 }
  0x2e   : > { %p1419_p5 = pneg %p1418_p4 }
  0x30   : > { %p1424_p0 = pnand %p1423_p10, %p1419_p5 }
  0x32   : > { %1427 = shalt.err (!%p1424_p0)
}
  0x33   : > { %s1517_s22 = smov 64   ;;  %s1518_s25 = smov 4  }
  0x34   : > { %1330 = dma.hbm_to_vmem [thread:$0]  (!%p1606_p13), %s150_s14, 1152, %s152_s8, %s140_s16, %s1517_s22, %s1517_s22, %s1518_s25  }
  0x35   : > { %163 = sbr.rel (%p1627_p2) target bundleno = 452 (0x1c4), region = 28  ;;  %s1650_s30 = sand.u32 (!%p1627_p2), 1, %s1505_s10  }
  0x36   : > { %s1314_s5 = smul.u32 (!%p1627_p2), 24, %s1650_s30  ;;  %s166_s6 = scalar_lea.sflag (!%p1627_p2), [#allocation3], %s1650_s30 }
  0x38   : > { %s169_s7 = scalar_lea.vmem (!%p1627_p2), [#allocation2], %s1314_s5 }
  0x3a   : > { %1488 = dma.done.wait (%p1583_p6), %s166_s6, 384  }
  0x3b   : > { %1490 = vsyncadd (%p1583_p6), %s166_s6, 4294966912  ;;  %s1315_s28 = smul.u32 72, %s1650_s30  ;;  %s176_s26 = scalar_lea.sflag [#allocation6], %s1650_s30 }
  0x3d   : > { %s1660_s8 = scalar_lea.vmem [#allocation5], %s1315_s28 }
  0x3e   : > { %1492 = dma.done.wait (%p1583_p6), %s176_s26, 1152  }
  0x3f   : > { %1494 = vsyncadd (%p1583_p6), %s176_s26, 4294966144  ;;  %v1210_v0 = vld [vmem:[%s169_s7] sm:$0xf]  ;;  %v1299_v1 = vld [vmem:[%s169_s7 + $0x8] sm:$0xf0]  ;;  %vm234_vm0 = vcmask 130048  }
  0x40   : > { %v1298_v2 = vld [vmem:[%s169_s7 + $0x4] sm:$0xf]  ;;  %v1211_v3 = vor.u32 %v1299_v1, %v1210_v0  ;;  %v1212_v4 = vld [vmem:[%s169_s7 + $0xc] sm:$0xf0]  ;;  %v1218_v5 = vld [vmem:[%s169_s7 + $0x8] sm:$0xf] }
  0x41   : > { %v1300_v6 = vld [vmem:[%s169_s7 + $0x10] sm:$0xf0]  ;;  %v1215_v7 = vor.u32 %v1298_v2, %v1212_v4  ;;  %v1302_v10 = vld [vmem:[%s1660_s8 + $0x8] sm:$0xff]  ;;  %v1304_v12 = vld [vmem:[%s1660_s8 + $0x18] sm:$0xff]  ;;  %s1316_s19 = smul.u32 48, %s1650_s30  ;;  %s1519_s14 = smov 127  }
  0x42   : > { %v1219_v8 = vor.u32 %v1300_v6, %v1218_v5  ;;  %v1301_v9 = vld [vmem:[%s1660_s8] sm:$0xff]  ;;  %245 = vmatpush.bf16.msra.mxu0 %v1211_v3  ;;  %304 = vmatpush.bf16.msra.mxu3 %v1211_v3  ;;  %v1303_v11 = vld [vmem:[%s1660_s8 + $0x10] sm:$0xff]  ;;  %v1306_v14 = vld [vmem:[%s1660_s8 + $0x28] sm:$0xff]  ;;  %s1520_s29 = smov 126   ;;  %s1521_s3 = smov 110   ;;  %vm363_vm1 = vcmask 1039360  }
  0x43   : > { %259 = vmatpush.bf16.msra.mxu1 %v1215_v7  ;;  %v1305_v13 = vld [vmem:[%s1660_s8 + $0x20] sm:$0xff]  ;;  %v1307_v15 = vld [vmem:[%s1660_s8 + $0x30] sm:$0xff]  ;;  %v1308_v16 = vld [vmem:[%s1660_s8 + $0x38] sm:$0xff]  ;;  %s1709_s16 = scalar_lea.vmem [#allocation7], %s1316_s19  ;;  %s1522_s4 = smov 109   ;;  %vm463_vm2 = vcmask 1031168  }
  0x44   : > { %273 = vmatpush.bf16.msra.mxu2 %v1219_v8  ;;  %v1309_v17 = vld [vmem:[%s1660_s8 + $0x40] sm:$0xff]  ;;  %s1523_s17 = smov 108   ;;  %s1524_s23 = smov 92   ;;  %vm563_vm3 = vcmask 900096   ;;  %vm663_vm4 = vcmask 891904   ;;  %vm763_vm5 = vcmask 883712  }
  0x45   : > { %1220 = vmatmul.msk.bf16.vlgmr.msra.gmra.mxu0 %vm234_vm0, %v1301_v9  ;;  %1229 = vmatmul.msk.bf16.vlgmr.msra.gmra.mxu3 %vm234_vm0, %v1302_v10  ;;  %s1525_s24 = smov 91   ;;  %s1526_s27 = smov 90   ;;  %vm863_vm6 = vcmask 752640   ;;  %vm963_vm7 = vcmask 744448   ;;  %vm1063_vm8 = vcmask 736256  }
  0x46   : > { %318 = vmatpush.bf16.msrb.mxu0 %v1215_v7  ;;  %1221 = vmatmul.msk.bf16.vlgmr.msra.gmra.mxu1 %vm234_vm0, %v1301_v9  ;;  %s1317_s22 = smul.u32 48, %s1565_s13  ;;  %s1099_s6 = sshll.u32 %s1709_s16, 4  ;;  %s1100_s6 = int_to_ptr.vmem [resolvable:$true] %s1099_s6 }
  0x47   : > { %332 = vmatpush.bf16.msrb.mxu1 %v1219_v8  ;;  %1222 = vmatmul.msk.bf16.vlgmr.msra.gmra.mxu2 %vm234_vm0, %v1301_v9  ;;  %s1087_s28 = scalar_lea.sflag [#allocation4], %s1650_s30 }
  0x48   : > { %404 = vmatpush.bf16.msrb.mxu2 %v1211_v3  ;;  %418 = vmatpush.bf16.msrb.mxu3 %v1215_v7  ;;  %s1098_s5 = scalar_lea.hbm %s1857_s2, %s1317_s22 }
  0x49   : > { %s1101_s7 = sshll.u32 %s1098_s5, 4  ;;  %s1102_s7 = int_to_ptr.hbm [resolvable:$true] %s1101_s7 }
  0x4a   : > { %432 = vmatpush.bf16.msra.mxu0 %v1219_v8  ;;  %s1457_s26 = sshra.s32 %s1102_s7, 4  ;;  %s1458_s26 = int_to_ptr.hbm [resolvable:$true] %s1457_s26 }
  0x4b   : > { %504 = vmatpush.bf16.msra.mxu1 %v1211_v3  ;;  %s1459_s8 = scalar_lea.hbm %s1458_s26, 48  ;;  %p1464_p2 = scmp.lt.s32.totalorder %s1458_s26, %s1857_s2 }
  0x4c   : > { %518 = vmatpush.bf16.msra.mxu2 %v1215_v7  ;;  %532 = vmatpush.bf16.msra.mxu3 %v1219_v8  ;;  %p1460_p6 = scmp.ne.s32.totalorder %s1458_s26, %s1459_s8 }
  0x4e   : > { %p1461_p13 = pnand %p1460_p6, %p1590_p11 }
  0x50   : > { %p1462_p1 = pneg %p1461_p13 }
  0x55   : > { %1230 = vmatmul.msk.bf16.vlgmr.msrb.gmra.mxu0 %vm234_vm0, %v1302_v10  ;;  %1239 = vmatmul.msk.bf16.vlgmr.msrb.gmra.mxu3 %vm234_vm0, %v1303_v11 }
  0x56   : > { %1231 = vmatmul.msk.bf16.vlgmr.msrb.gmra.mxu1 %vm234_vm0, %v1302_v10  ;;  %604 = vmatpush.bf16.msrb.mxu0 %v1211_v3 }
  0x57   : > { %1238 = vmatmul.msk.bf16.vlgmr.msrb.gmra.mxu2 %vm234_vm0, %v1303_v11  ;;  %618 = vmatpush.bf16.msrb.mxu1 %v1215_v7 }
  0x58   : > { %704 = vmatpush.bf16.msrb.mxu3 %v1211_v3  ;;  %632 = vmatpush.bf16.msrb.mxu2 %v1219_v8 }
  0x65   : > { %1240 = vmatmul.msk.bf16.vlgmr.msra.gmra.mxu0 %vm234_vm0, %v1303_v11  ;;  %1249 = vmatmul.msk.bf16.vlgmr.msra.gmra.mxu3 %vm234_vm0, %v1304_v12 }
  0x66   : > { %1247 = vmatmul.msk.bf16.vlgmr.msra.gmra.mxu1 %vm234_vm0, %v1304_v12  ;;  %718 = vmatpush.bf16.msra.mxu0 %v1215_v7 }
  0x67   : > { %1248 = vmatmul.msk.bf16.vlgmr.msra.gmra.mxu2 %vm234_vm0, %v1304_v12  ;;  %818 = vmatpush.bf16.msra.mxu3 %v1215_v7 }
  0x68   : > { %804 = vmatpush.bf16.msra.mxu2 %v1211_v3  ;;  %732 = vmatpush.bf16.msra.mxu1 %v1219_v8 }
  0x75   : > { %1256 = vmatmul.msk.bf16.vlgmr.msrb.gmra.mxu0 %vm234_vm0, %v1305_v13  ;;  %1265 = vmatmul.msk.bf16.vlgmr.msrb.gmra.mxu3 %vm234_vm0, %v1306_v14 }
  0x76   : > { %1257 = vmatmul.msk.bf16.vlgmr.msrb.gmra.mxu1 %vm234_vm0, %v1305_v13  ;;  %832 = vmatpush.bf16.msrb.mxu0 %v1219_v8 }
  0x77   : > { %1258 = vmatmul.msk.bf16.vlgmr.msrb.gmra.mxu2 %vm234_vm0, %v1305_v13  ;;  %904 = vmatpush.bf16.msrb.mxu1 %v1211_v3 }
  0x78   : > { %918 = vmatpush.bf16.msrb.mxu2 %v1215_v7  ;;  %932 = vmatpush.bf16.msrb.mxu3 %v1219_v8 }
  0x85   : > { %1266 = vmatmul.msk.bf16.vlgmr.msra.gmra.mxu0 %vm234_vm0, %v1306_v14  ;;  %1275 = vmatmul.msk.bf16.vlgmr.msra.gmra.mxu3 %vm234_vm0, %v1307_v15 }
  0x86   : > { %1267 = vmatmul.msk.bf16.vlgmr.msra.gmra.mxu1 %vm234_vm0, %v1306_v14  ;;  %1004 = vmatpush.bf16.msra.mxu0 %v1211_v3 }
  0x87   : > { %1274 = vmatmul.msk.bf16.vlgmr.msra.gmra.mxu2 %vm234_vm0, %v1307_v15  ;;  %1018 = vmatpush.bf16.msra.mxu1 %v1215_v7 }
  0x88   : > { %1032 = vmatpush.bf16.msra.mxu2 %v1219_v8 }
  0x95   : > { %1276 = vmatmul.msk.bf16.vlgmr.msrb.gmra.mxu0 %vm234_vm0, %v1307_v15  ;;  %1285 = vmatmul.msk.bf16.vlgmr.msrb.gmra.mxu3 %vm234_vm0, %v1308_v16 }
  0x96   : > { %1283 = vmatmul.msk.bf16.vlgmr.msrb.gmra.mxu1 %vm234_vm0, %v1308_v16 }
  0x97   : > { %1284 = vmatmul.msk.bf16.vlgmr.msrb.gmra.mxu2 %vm234_vm0, %v1308_v16 }
  0xa5   : > { %1292 = vmatmul.msk.bf16.vlgmr.msra.gmra.mxu0 %vm234_vm0, %v1309_v17 }
  0xa6   : > { %1293 = vmatmul.msk.bf16.vlgmr.msra.gmra.mxu1 %vm234_vm0, %v1309_v17 }
  0xa7   : > { %1294 = vmatmul.msk.bf16.vlgmr.msra.gmra.mxu2 %vm234_vm0, %v1309_v17 }
  0xc2   : > { %v1702_v18 = vpop.f32.mrf.mxu0 }
  0xc3   : > { %v1705_v19 = vpop.f32.mrf.mxu1 }
  0xc8   : > { %v306_v20 = vpop.f32.mrf.mxu3 }
  0xc9   : > { %351 = vrot.lane.b32.xlu0 %v306_v20, %s1519_s14 }
  0xca   : > { %v1707_v21 = vpop.f32.mrf.mxu2  ;;  %v1713_v22 = vpop.f32.mrf.mxu0 }
  0xcb   : > { %282 = vst [vmem:[%s1709_s16 + $0x10] sm:$0xff] %v1707_v21  ;;  %v1715_v23 = vpop.f32.mrf.mxu1 }
  0xd0   : > { %v308_v24 = vpop.f32.mrf.mxu3 }
  0xd1   : > { %357 = vrot.lane.b32.xlu1 %v308_v24, %s1519_s14 }
  0xd2   : > { %v1717_v25 = vpop.f32.mrf.mxu2  ;;  %v320_v26 = vpop.f32.mrf.mxu0 }
  0xd3   : > { %285 = vst [vmem:[%s1709_s16 + $0x28] sm:$0xff] %v1717_v25  ;;  %353 = vrot.lane.b32.xlu0 %v320_v26, %s1519_s14  ;;  %v334_v27 = vpop.f32.mrf.mxu1 }
  0xd8   : > { %v420_v30 = vpop.f32.mrf.mxu3 }
  0xd9   : > { %355 = vrot.lane.b32.xlu1 %v334_v27, %s1519_s14 }
  0xda   : > { %v406_v28 = vpop.f32.mrf.mxu2  ;;  %v322_v29 = vpop.f32.mrf.mxu0 }
  0xdb   : > { %451 = vrot.lane.b32.xlu0 %v406_v28, %s1520_s29  ;;  %359 = vrot.lane.b32.xlu2 %v322_v29, %s1519_s14  ;;  %v336_v31 = vpop.f32.mrf.mxu1 }
  0xe0   : > { %v422_v33 = vpop.f32.mrf.mxu3 }
  0xe1   : > { %453 = vrot.lane.b32.xlu1 %v420_v30, %s1520_s29 }
  0xe2   : > { %v408_v32 = vpop.f32.mrf.mxu2  ;;  %v434_v34 = vpop.f32.mrf.mxu0 }
  0xe3   : > { %457 = vrot.lane.b32.xlu0 %v408_v32, %s1520_s29  ;;  %361 = vrot.lane.b32.xlu2 %v336_v31, %s1519_s14  ;;  %v506_v35 = vpop.f32.mrf.mxu1 }
  0xe8   : > { %v534_v37 = vpop.f32.mrf.mxu3 }
  0xe9   : > { %459 = vrot.lane.b32.xlu1 %v422_v33, %s1520_s29 }
  0xea   : > { %v520_v36 = vpop.f32.mrf.mxu2  ;;  %v436_v38 = vpop.f32.mrf.mxu0 }
  0xeb   : > { %455 = vrot.lane.b32.xlu2 %v434_v34, %s1520_s29  ;;  %551 = vrot.lane.b32.xlu0 %v506_v35, %s1521_s3  ;;  %v508_v39 = vpop.f32.mrf.mxu1 }
  0xf0   : > { %v536_v41 = vpop.f32.mrf.mxu3 }
  0xf1   : > { %553 = vrot.lane.b32.xlu1 %v520_v36, %s1521_s3 }
  0xf2   : > { %v522_v40 = vpop.f32.mrf.mxu2  ;;  %v606_v42 = vpop.f32.mrf.mxu0 }
  0xf3   : > { %555 = vrot.lane.b32.xlu2 %v534_v37, %s1521_s3  ;;  %557 = vrot.lane.b32.xlu0 %v508_v39, %s1521_s3  ;;  %v620_v43 = vpop.f32.mrf.mxu1 }
  0xf8   : > { %v706_v44 = vpop.f32.mrf.mxu3 }
  0xf9   : > { %559 = vrot.lane.b32.xlu1 %v522_v40, %s1521_s3 }
  0xfa   : > { %v634_v45 = vpop.f32.mrf.mxu2  ;;  %v608_v46 = vpop.f32.mrf.mxu0 }
  0xfb   : > { %461 = vrot.lane.b32.xlu2 %v436_v38, %s1520_s29  ;;  %651 = vrot.lane.b32.xlu0 %v606_v42, %s1522_s4  ;;  %v622_v47 = vpop.f32.mrf.mxu1  ;;  %s1463_s29 = scalar_lea.hbm %s1857_s2, 96 }
  0xfc   : > { %p1465_p3 = scmp.lt.s32.totalorder %s1463_s29, %s1459_s8 }
  0xfe   : > { %p1466_p4 = por %p1465_p3, %p1464_p2 }
 0x100   : > { %v708_v48 = vpop.f32.mrf.mxu3  ;;  %p1467_p5 = pnand %p1466_p4, %p1462_p1 }
 0x101   : > { %653 = vrot.lane.b32.xlu1 %v620_v43, %s1522_s4 }
 0x102   : > { %v636_v49 = vpop.f32.mrf.mxu2  ;;  %v720_v50 = vpop.f32.mrf.mxu0 }
 0x103   : > { %561 = vrot.lane.b32.xlu2 %v536_v41, %s1521_s3  ;;  %751 = vrot.lane.b32.xlu0 %v706_v44, %s1523_s17  ;;  %v734_v51 = vpop.f32.mrf.mxu1 }
 0x108   : > { %v820_v52 = vpop.f32.mrf.mxu3 }
 0x109   : > { %659 = vrot.lane.b32.xlu1 %v622_v47, %s1522_s4 }
 0x10a   : > { %v806_v53 = vpop.f32.mrf.mxu2  ;;  %v722_v54 = vpop.f32.mrf.mxu0 }
 0x10b   : > { %655 = vrot.lane.b32.xlu2 %v634_v45, %s1522_s4  ;;  %657 = vrot.lane.b32.xlu0 %v608_v46, %s1522_s4  ;;  %v736_v55 = vpop.f32.mrf.mxu1 }
 0x110   : > { %v822_v58 = vpop.f32.mrf.mxu3 }
 0x111   : > { %753 = vrot.lane.b32.xlu1 %v720_v50, %s1523_s17 }
 0x112   : > { %v808_v56 = vpop.f32.mrf.mxu2  ;;  %v834_v57 = vpop.f32.mrf.mxu0 }
 0x113   : > { %661 = vrot.lane.b32.xlu2 %v636_v49, %s1522_s4  ;;  %757 = vrot.lane.b32.xlu0 %v708_v48, %s1523_s17  ;;  %v906_v59 = vpop.f32.mrf.mxu1 }
 0x118   : > { %v934_v62 = vpop.f32.mrf.mxu3 }
 0x119   : > { %853 = vrot.lane.b32.xlu1 %v820_v52, %s1524_s23 }
 0x11a   : > { %v920_v60 = vpop.f32.mrf.mxu2  ;;  %v836_v61 = vpop.f32.mrf.mxu0 }
 0x11b   : > { %851 = vrot.lane.b32.xlu0 %v806_v53, %s1524_s23  ;;  %755 = vrot.lane.b32.xlu2 %v734_v51, %s1523_s17  ;;  %v908_v63 = vpop.f32.mrf.mxu1 }
 0x120   : > { %v936_v8 = vpop.f32.mrf.mxu3 }
 0x121   : > { %759 = vrot.lane.b32.xlu1 %v722_v54, %s1523_s17 }
 0x122   : > { %v922_v1 = vpop.f32.mrf.mxu2  ;;  %v1006_v2 = vpop.f32.mrf.mxu0 }
 0x123   : > { %857 = vrot.lane.b32.xlu0 %v808_v56, %s1524_s23  ;;  %761 = vrot.lane.b32.xlu2 %v736_v55, %s1523_s17  ;;  %v1020_v5 = vpop.f32.mrf.mxu1 }
 0x129   : > { %859 = vrot.lane.b32.xlu1 %v822_v58, %s1524_s23 }
 0x12a   : > { %v1008_v9 = vpop.f32.mrf.mxu0  ;;  %v1034_v15 = vpop.f32.mrf.mxu2 }
 0x12b   : > { %855 = vrot.lane.b32.xlu2 %v834_v57, %s1524_s23  ;;  %951 = vrot.lane.b32.xlu0 %v906_v59, %s1525_s24  ;;  %v1022_v16 = vpop.f32.mrf.mxu1 }
 0x131   : > { %953 = vrot.lane.b32.xlu1 %v920_v60, %s1525_s24 }
 0x132   : > { %v1036_v27 = vpop.f32.mrf.mxu2 }
 0x133   : > { %955 = vrot.lane.b32.xlu2 %v934_v62, %s1525_s24  ;;  %957 = vrot.lane.b32.xlu0 %v908_v63, %s1525_s24 }
 0x135   : > { %v360_v0 = vpop.permute.xlu2 %359 }
 0x139   : > { %959 = vrot.lane.b32.xlu1 %v922_v1, %s1525_s24 }
 0x13b   : > { %861 = vrot.lane.b32.xlu2 %v836_v61, %s1524_s23  ;;  %1051 = vrot.lane.b32.xlu0 %v1006_v2, %s1526_s27  ;;  %v352_v3 = vpop.permute.xlu0 %351 }
 0x13d   : > { %v362_v4 = vpop.permute.xlu2 %361 }
 0x13e   : > { %v367_v6 = vsel %vm363_vm1, %v360_v0, %v362_v4  ;;  %v379_v7 = vadd.f32 %v362_v4, %v1717_v25 }
 0x140   : > { %385 = vst.msk [vmem:[%s1709_s16 + $0x28] sm:$0xff] %vm363_vm1, %v379_v7 }
 0x141   : > { %1053 = vrot.lane.b32.xlu1 %v1020_v5, %s1526_s27 }
 0x143   : > { %v358_v10 = vpop.permute.xlu1 %357  ;;  %961 = vrot.lane.b32.xlu2 %v936_v8, %s1525_s24  ;;  %1057 = vrot.lane.b32.xlu0 %v1008_v9, %s1526_s27 }
 0x144   : > { %v366_v11 = vsel %vm363_vm1, %v358_v10, %v360_v0 }
 0x145   : > { %v354_v12 = vpop.permute.xlu0 %353  ;;  %v456_v13 = vpop.permute.xlu2 %455 }
 0x146   : > { %v364_v14 = vsel %vm363_vm1, %v352_v3, %v354_v12 }
 0x147   : > { %v374_v28 = vadd.f32 %v364_v14, %v1702_v18  ;;  %v444_v36 = vld [vmem:[%s1709_s16 + $0x28] sm:$0xff]  ;;  %v378_v18 = vadd.f32 %v367_v6, %v1715_v23 }
 0x149   : > { %1059 = vrot.lane.b32.xlu1 %v1022_v16, %s1526_s27 }
 0x14b   : > { %v356_v17 = vpop.permute.xlu1 %355  ;;  %1055 = vrot.lane.b32.xlu2 %v1034_v15, %s1526_s27 }
 0x14c   : > { %v365_v20 = vsel %vm363_vm1, %v354_v12, %v356_v17  ;;  %v376_v24 = vadd.f32 %v356_v17, %v1707_v21 }
 0x14d   : > { %v452_v25 = vpop.permute.xlu0 %451  ;;  %v556_v26 = vpop.permute.xlu2 %555  ;;  %v375_v29 = vadd.f32 %v365_v20, %v1705_v19  ;;  %v377_v19 = vadd.f32 %v366_v11, %v1713_v22 }
 0x14e   : > { %382 = vst.msk [vmem:[%s1709_s16 + $0x10] sm:$0xff] %vm363_vm1, %v376_v24 }
 0x153   : > { %v454_v30 = vpop.permute.xlu1 %453  ;;  %1061 = vrot.lane.b32.xlu2 %v1036_v27, %s1526_s27 }
 0x154   : > { %v464_v31 = vsel %vm463_vm2, %v452_v25, %v454_v30  ;;  %v465_v21 = vsel %vm463_vm2, %v454_v30, %v456_v13 }
 0x155   : > { %v441_v32 = vld [vmem:[%s1709_s16 + $0x10] sm:$0xff]  ;;  %v474_v33 = vadd.f32 %v464_v31, %v374_v28  ;;  %v475_v34 = vadd.f32 %v465_v21, %v375_v29  ;;  %v458_v35 = vpop.permute.xlu0 %457  ;;  %v462_v37 = vpop.permute.xlu2 %461 }
 0x156   : > { %v476_v38 = vadd.f32 %v456_v13, %v441_v32  ;;  %v479_v39 = vadd.f32 %v462_v37, %v444_v36 }
 0x158   : > { %482 = vst.msk [vmem:[%s1709_s16 + $0x10] sm:$0xff] %vm463_vm2, %v476_v38 }
 0x159   : > { %485 = vst.msk [vmem:[%s1709_s16 + $0x28] sm:$0xff] %vm463_vm2, %v479_v39 }
 0x15b   : > { %v460_v40 = vpop.permute.xlu1 %459 }
 0x15c   : > { %v466_v41 = vsel %vm463_vm2, %v458_v35, %v460_v40  ;;  %v467_v42 = vsel %vm463_vm2, %v460_v40, %v462_v37 }
 0x15d   : > { %v477_v43 = vadd.f32 %v466_v41, %v377_v19  ;;  %v478_v44 = vadd.f32 %v467_v42, %v378_v18  ;;  %v562_v45 = vpop.permute.xlu2 %561  ;;  %v552_v46 = vpop.permute.xlu0 %551 }
 0x15f   : > { %v541_v47 = vld [vmem:[%s1709_s16 + $0x10] sm:$0xff] }
 0x160   : > { %v576_v48 = vadd.f32 %v556_v26, %v541_v47  ;;  %v544_v49 = vld [vmem:[%s1709_s16 + $0x28] sm:$0xff] }
 0x161   : > { %v579_v50 = vadd.f32 %v562_v45, %v544_v49 }
 0x162   : > { %582 = vst.msk [vmem:[%s1709_s16 + $0x10] sm:$0xff] %vm563_vm3, %v576_v48 }
 0x163   : > { %v554_v23 = vpop.permute.xlu1 %553  ;;  %585 = vst.msk [vmem:[%s1709_s16 + $0x28] sm:$0xff] %vm563_vm3, %v579_v50 }
 0x164   : > { %v564_v22 = vsel %vm563_vm3, %v552_v46, %v554_v23  ;;  %v565_v51 = vsel %vm563_vm3, %v554_v23, %v556_v26 }
 0x165   : > { %v574_v52 = vadd.f32 %v564_v22, %v474_v33  ;;  %v575_v53 = vadd.f32 %v565_v51, %v475_v34  ;;  %v656_v54 = vpop.permute.xlu2 %655  ;;  %v558_v55 = vpop.permute.xlu0 %557 }
 0x169   : > { %v641_v56 = vld [vmem:[%s1709_s16 + $0x10] sm:$0xff] }
 0x16a   : > { %v676_v57 = vadd.f32 %v656_v54, %v641_v56  ;;  %v644_v63 = vld [vmem:[%s1709_s16 + $0x28] sm:$0xff] }
 0x16b   : > { %v560_v58 = vpop.permute.xlu1 %559 }
 0x16c   : > { %v566_v59 = vsel %vm563_vm3, %v558_v55, %v560_v58  ;;  %v567_v60 = vsel %vm563_vm3, %v560_v58, %v562_v45  ;;  %682 = vst.msk [vmem:[%s1709_s16 + $0x10] sm:$0xff] %vm663_vm4, %v676_v57 }
 0x16d   : > { %v577_v61 = vadd.f32 %v566_v59, %v477_v43  ;;  %v578_v62 = vadd.f32 %v567_v60, %v478_v44  ;;  %v662_v0 = vpop.permute.xlu2 %661  ;;  %v652_v1 = vpop.permute.xlu0 %651 }
 0x16e   : > { %v679_v2 = vadd.f32 %v662_v0, %v644_v63 }
 0x170   : > { %685 = vst.msk [vmem:[%s1709_s16 + $0x28] sm:$0xff] %vm663_vm4, %v679_v2 }
 0x173   : > { %v654_v3 = vpop.permute.xlu1 %653  ;;  %v741_v9 = vld [vmem:[%s1709_s16 + $0x10] sm:$0xff] }
 0x174   : > { %v664_v4 = vsel %vm663_vm4, %v652_v1, %v654_v3  ;;  %v665_v5 = vsel %vm663_vm4, %v654_v3, %v656_v54 }
 0x175   : > { %v674_v6 = vadd.f32 %v664_v4, %v574_v52  ;;  %v675_v7 = vadd.f32 %v665_v5, %v575_v53  ;;  %v752_v8 = vpop.permute.xlu0 %751  ;;  %v756_v10 = vpop.permute.xlu2 %755 }
 0x176   : > { %v776_v11 = vadd.f32 %v756_v10, %v741_v9 }
 0x177   : > { %v744_v16 = vld [vmem:[%s1709_s16 + $0x28] sm:$0xff] }
 0x178   : > { %782 = vst.msk [vmem:[%s1709_s16 + $0x10] sm:$0xff] %vm763_vm5, %v776_v11 }
 0x17b   : > { %v660_v12 = vpop.permute.xlu1 %659 }
 0x17c   : > { %v667_v13 = vsel %vm663_vm4, %v660_v12, %v662_v0 }
 0x17d   : > { %v1773_v14 = vadd.f32 %v667_v13, %v578_v62  ;;  %v658_v15 = vpop.permute.xlu0 %657  ;;  %v762_v17 = vpop.permute.xlu2 %761 }
 0x17e   : > { %v666_v20 = vsel %vm663_vm4, %v658_v15, %v660_v12  ;;  %v779_v24 = vadd.f32 %v762_v17, %v744_v16 }
 0x17f   : > { %v1777_v25 = vadd.f32 %v666_v20, %v577_v61  ;;  %v841_v28 = vld [vmem:[%s1709_s16 + $0x10] sm:$0xff] }
 0x180   : > { %785 = vst.msk [vmem:[%s1709_s16 + $0x28] sm:$0xff] %vm763_vm5, %v779_v24 }
 0x183   : > { %v754_v26 = vpop.permute.xlu1 %753 }
 0x184   : > { %v764_v49 = vsel %vm763_vm5, %v752_v8, %v754_v26  ;;  %v765_v50 = vsel %vm763_vm5, %v754_v26, %v756_v10 }
 0x185   : > { %v758_v27 = vpop.permute.xlu0 %757  ;;  %v856_v29 = vpop.permute.xlu2 %855  ;;  %v774_v54 = vadd.f32 %v764_v49, %v674_v6  ;;  %v775_v55 = vadd.f32 %v765_v50, %v675_v7 }
 0x186   : > { %v876_v30 = vadd.f32 %v856_v29, %v841_v28 }
 0x187   : > { %v844_v37 = vld [vmem:[%s1709_s16 + $0x28] sm:$0xff] }
 0x188   : > { %882 = vst.msk [vmem:[%s1709_s16 + $0x10] sm:$0xff] %vm863_vm6, %v876_v30 }
 0x18b   : > { %v854_v31 = vpop.permute.xlu1 %853 }
 0x18c   : > { %v865_v51 = vsel %vm863_vm6, %v854_v31, %v856_v29 }
 0x18d   : > { %v852_v21 = vpop.permute.xlu0 %851  ;;  %v956_v32 = vpop.permute.xlu2 %955  ;;  %v875_v58 = vadd.f32 %v865_v51, %v775_v55 }
 0x18e   : > { %v864_v52 = vsel %vm863_vm6, %v852_v21, %v854_v31 }
 0x18f   : > { %v941_v33 = vld [vmem:[%s1709_s16 + $0x10] sm:$0xff]  ;;  %v874_v59 = vadd.f32 %v864_v52, %v774_v54 }
 0x190   : > { %v976_v34 = vadd.f32 %v956_v32, %v941_v33 }
 0x192   : > { %982 = vst.msk [vmem:[%s1709_s16 + $0x10] sm:$0xff] %vm963_vm7, %v976_v34 }
 0x193   : > { %v760_v35 = vpop.permute.xlu1 %759 }
 0x194   : > { %v766_v0 = vsel %vm763_vm5, %v758_v27, %v760_v35  ;;  %v767_v1 = vsel %vm763_vm5, %v760_v35, %v762_v17 }
 0x195   : > { %v858_v36 = vpop.permute.xlu0 %857  ;;  %v862_v38 = vpop.permute.xlu2 %861  ;;  %v777_v8 = vadd.f32 %v766_v0, %v1777_v25  ;;  %v778_v9 = vadd.f32 %v767_v1, %v1773_v14 }
 0x196   : > { %v879_v39 = vadd.f32 %v862_v38, %v844_v37 }
 0x198   : > { %885 = vst.msk [vmem:[%s1709_s16 + $0x28] sm:$0xff] %vm863_vm6, %v879_v39 }
 0x199   : > { %v1041_v44 = vld [vmem:[%s1709_s16 + $0x10] sm:$0xff] }
 0x19b   : > { %v860_v18 = vpop.permute.xlu1 %859 }
 0x19c   : > { %v866_v6 = vsel %vm863_vm6, %v858_v36, %v860_v18  ;;  %v867_v7 = vsel %vm863_vm6, %v860_v18, %v862_v38 }
 0x19d   : > { %v962_v19 = vpop.permute.xlu2 %961  ;;  %v952_v40 = vpop.permute.xlu0 %951  ;;  %v877_v12 = vadd.f32 %v866_v6, %v777_v8  ;;  %v878_v13 = vadd.f32 %v867_v7, %v778_v9 }
 0x19f   : > { %v944_v41 = vld [vmem:[%s1709_s16 + $0x28] sm:$0xff] }
 0x1a0   : > { %v979_v42 = vadd.f32 %v962_v19, %v944_v41 }
 0x1a2   : > { %985 = vst.msk [vmem:[%s1709_s16 + $0x28] sm:$0xff] %vm963_vm7, %v979_v42 }
 0x1a3   : > { %v954_v43 = vpop.permute.xlu1 %953 }
 0x1a4   : > { %v964_v56 = vsel %vm963_vm7, %v952_v40, %v954_v43  ;;  %v965_v57 = vsel %vm963_vm7, %v954_v43, %v956_v32 }
 0x1a5   : > { %v1056_v45 = vpop.permute.xlu2 %1055  ;;  %v958_v47 = vpop.permute.xlu0 %957  ;;  %v974_v61 = vadd.f32 %v964_v56, %v874_v59  ;;  %v975_v62 = vadd.f32 %v965_v57, %v875_v58 }
 0x1a6   : > { %v1076_v46 = vadd.f32 %v1056_v45, %v1041_v44 }
 0x1a8   : > { %1082 = vst.msk [vmem:[%s1709_s16 + $0x10] sm:$0xff] %vm1063_vm8, %v1076_v46 }
 0x1a9   : > { %v1044_v23 = vld [vmem:[%s1709_s16 + $0x28] sm:$0xff] }
 0x1ab   : > { %v960_v48 = vpop.permute.xlu1 %959 }
 0x1ac   : > { %v966_v10 = vsel %vm963_vm7, %v958_v47, %v960_v48  ;;  %v967_v11 = vsel %vm963_vm7, %v960_v48, %v962_v19 }
 0x1ad   : > { %v1062_v22 = vpop.permute.xlu2 %1061  ;;  %v1052_v60 = vpop.permute.xlu0 %1051  ;;  %v977_v15 = vadd.f32 %v966_v10, %v877_v12  ;;  %v978_v16 = vadd.f32 %v967_v11, %v878_v13 }
 0x1ae   : > { %v1079_v53 = vadd.f32 %v1062_v22, %v1044_v23 }
 0x1b0   : > { %1085 = vst.msk [vmem:[%s1709_s16 + $0x28] sm:$0xff] %vm1063_vm8, %v1079_v53 }
 0x1b3   : > { %v1054_v63 = vpop.permute.xlu1 %1053 }
 0x1b4   : > { %v1064_v2 = vsel %vm1063_vm8, %v1052_v60, %v1054_v63  ;;  %v1065_v3 = vsel %vm1063_vm8, %v1054_v63, %v1056_v45 }
 0x1b5   : > { %v1074_v4 = vadd.f32 %v1064_v2, %v974_v61  ;;  %v1075_v5 = vadd.f32 %v1065_v3, %v975_v62  ;;  %v1058_v14 = vpop.permute.xlu0 %1057 }
 0x1b7   : > { %1080 = vst [vmem:[%s1709_s16] sm:$0xff] %v1074_v4 }
 0x1b8   : > { %1081 = vst [vmem:[%s1709_s16 + $0x8] sm:$0xff] %v1075_v5 }
 0x1bb   : > { %v1060_v17 = vpop.permute.xlu1 %1059 }
 0x1bc   : > { %v1066_v20 = vsel %vm1063_vm8, %v1058_v14, %v1060_v17  ;;  %v1067_v24 = vsel %vm1063_vm8, %v1060_v17, %v1062_v22 }
 0x1bd   : > { %v1077_v25 = vadd.f32 %v1066_v20, %v977_v15  ;;  %v1078_v26 = vadd.f32 %v1067_v24, %v978_v16 }
 0x1bf   : > { %1083 = vst [vmem:[%s1709_s16 + $0x18] sm:$0xff] %v1077_v25 }
 0x1c0   : > { %1084 = vst [vmem:[%s1709_s16 + $0x20] sm:$0xff] %v1078_v26 }
 0x1c1   : > { %1470 = shalt.err (!%p1467_p5)
}
 0x1c2   : > { %s1527_s30 = smov 384   ;;  %s1528_s16 = smov 24  }
 0x1c3   : > { %1322 = dma.vmem_to_hbm [thread:$0]  (%p1590_p11), %s1100_s6, 768, %s1102_s7, %s1087_s28, %s1527_s30, %s1527_s30, %s1528_s16  }
 0x1c4 PF: > { %s1116_s17 = sand.u32 1, %s1501_s9   ;;  %p1332_p7 = pnand %p1200_p9, %p1594_p12 }
 0x1c5   : > { %s1117_s23 = scalar_lea.sflag [#allocation4], %s1116_s17 }
 0x1c6   : > { %p1333_p8 = pneg %p1332_p7 }
 0x1c8   : > { %1496 = dma.done.wait (%p1333_p8), %s1117_s23, 768  }
 0x1c9   : > { %1498 = vsyncadd (%p1333_p8), %s1117_s23, 4294966528  ;;  %p18_p10 = scmp.ge.s32.totalorder %s1569_s15, 4   ;;  %s1863_s9 = smov %s1505_s10 }
 0x1ca   : > { %s1864_s10 = smov %s1509_s11  ;;  %s1865_s11 = smov %s1581_s18 }
 0x1cb   : > { %s1866_s12 = smov %s1569_s15  ;;  %20 = sbr.rel (!%p18_p10) target bundleno = 7 (0x7), region = 94 }
 0x1d0   :  { %1123 = vsyncpa [#allocation3], 1 }
 0x1d1   :  { %1125 = vsyncpa [#allocation3 + $0x1], 1 }
 0x1d2   :  { %1126 = vsyncpa [#allocation6], 1 }
 0x1d3   :  { %1128 = vsyncpa [#allocation6 + $0x1], 1 }
 0x1d4   :  { %1129 = vsyncpa [#allocation4], 1 }
 0x1d5   :  { %1131 = vsyncpa [#allocation4 + $0x1], 1 }

</bundles_post_ra>
